<compile_context>
chip_gen: v7x
topology: tpu7x:2x2x1
jax: 0.10.0
libtpu: 0.0.40
codegen_flags: <defaults>
</compile_context>

<pallas_src>
import functools

import jax
import jax.numpy as jnp
from jax.experimental import pallas as pl
from jax.experimental.pallas import tpu as pltpu

LANE = 128
HIDDEN = 128


def _round_up(n, m):
    return ((n + m - 1) // m) * m


def alphazero_kernel(x_ref, w1_ref, b1_ref, w2_ref, b2_ref, wh_ref, bh_ref,
                     out_ref, *, action_dim):
    # x tile: (TB, D_in_pad) bf16; weights bf16; biases f32; accumulate f32.
    x = x_ref[...]

    # fc1 + relu (f32 accumulation, f32 elementwise)
    h1 = jnp.dot(x, w1_ref[...], preferred_element_type=jnp.float32) + b1_ref[...]
    h1 = jnp.maximum(h1, 0.0)

    # fc2 + relu
    h2 = jnp.dot(h1.astype(jnp.bfloat16), w2_ref[...],
                 preferred_element_type=jnp.float32) + b2_ref[...]
    h2 = jnp.maximum(h2, 0.0)

    # fused policy+value head: one lane-dense (HIDDEN, HEAD_PAD) matmul
    z = jnp.dot(h2.astype(jnp.bfloat16), wh_ref[...],
                preferred_element_type=jnp.float32) + bh_ref[...]

    lane = jax.lax.broadcasted_iota(jnp.int32, z.shape, dimension=1)
    policy_mask = lane < action_dim

    # softmax over the real policy lanes only
    masked_logits = jnp.where(policy_mask, z, jnp.float32(-1e30))
    m = jnp.max(masked_logits, axis=-1, keepdims=True)
    e = jnp.where(policy_mask, jnp.exp(masked_logits - m), 0.0)
    s = jnp.sum(e, axis=-1, keepdims=True)
    inv = 1.0 / s                      # one reciprocal per row
    policy = e * inv

    # value = tanh of the head column at index action_dim (computed on all
    # lanes on the EUP, then selected — no cross-lane extraction needed)
    value = jnp.tanh(z)

    out_ref[...] = jnp.where(policy_mask, policy,
                             jnp.where(lane == action_dim, value, 0.0))


def alphazero_forward(x, params, *, block_b=512):
    """x: (B, input_dim) float32.  Returns (policy (B, action_dim), value (B, 1))."""
    B, input_dim = x.shape
    hidden = params["w1"].shape[1]
    action_dim = params["wp"].shape[1]

    d_in_pad = _round_up(max(input_dim, 1), LANE)       # lane-align x / W1's K dim
    head_pad = _round_up(action_dim + 1, LANE)          # lane-dense fused head

    # Batch tile: one tile for small B, else 512-row tiles (v7x VMEM-safe).
    tb = min(block_b, _round_up(B, 8))
    b_pad = _round_up(B, tb)

    f32 = jnp.float32
    bf16 = jnp.bfloat16

    # Pad + cast operands once on the host side (matmul operands -> bf16).
    x_p = jnp.zeros((b_pad, d_in_pad), bf16).at[:B, :input_dim].set(x.astype(bf16))
    w1 = jnp.zeros((d_in_pad, hidden), bf16).at[:input_dim, :].set(
        params["w1"].astype(bf16))
    b1 = params["b1"].reshape(1, hidden).astype(f32)
    w2 = params["w2"].astype(bf16)
    b2 = params["b2"].reshape(1, hidden).astype(f32)

    # Fused head weight/bias: [policy | value | zero padding]
    wh = jnp.zeros((hidden, head_pad), f32)
    wh = wh.at[:, :action_dim].set(params["wp"])
    wh = wh.at[:, action_dim:action_dim + 1].set(params["wv"])
    wh = wh.astype(bf16)
    bh = jnp.zeros((1, head_pad), f32)
    bh = bh.at[:, :action_dim].set(params["bp"].reshape(1, action_dim))
    bh = bh.at[:, action_dim:action_dim + 1].set(params["bv"].reshape(1, 1))

    const = lambda i: (0, 0)   # weights/biases stay block-resident across the grid

    out = pl.pallas_call(
        functools.partial(alphazero_kernel, action_dim=action_dim),
        out_shape=jax.ShapeDtypeStruct((b_pad, head_pad), f32),
        grid_spec=pltpu.PrefetchScalarGridSpec(
            num_scalar_prefetch=0,
            grid=(b_pad // tb,),
            in_specs=[
                pl.BlockSpec((tb, d_in_pad), lambda i: (i, 0)),   # x tile
                pl.BlockSpec((d_in_pad, hidden), const),          # W1
                pl.BlockSpec((1, hidden), const),                 # b1
                pl.BlockSpec((hidden, hidden), const),            # W2
                pl.BlockSpec((1, hidden), const),                 # b2
                pl.BlockSpec((hidden, head_pad), const),          # fused head W
                pl.BlockSpec((1, head_pad), const),               # fused head b
            ],
            out_specs=pl.BlockSpec((tb, head_pad), lambda i: (i, 0)),
        ),
        compiler_params=pltpu.CompilerParams(
            dimension_semantics=("parallel",)),
    )(x_p, w1, b1, w2, b2, wh, bh)

    policy = out[:B, :action_dim]
    value = out[:B, action_dim:action_dim + 1]
    return policy, value


def init_params(key, input_dim, action_dim, hidden=HIDDEN):
    """Deterministic synthetic init (PyTorch-Linear-like uniform bounds)."""
    ks = jax.random.split(key, 8)

    def linear(kw, kb, fan_in, fan_out):
        bound = 1.0 / jnp.sqrt(fan_in)
        w = jax.random.uniform(kw, (fan_in, fan_out), jnp.float32, -bound, bound)
        b = jax.random.uniform(kb, (1, fan_out), jnp.float32, -bound, bound)
        return w, b

    w1, b1 = linear(ks[0], ks[1], input_dim, hidden)
    w2, b2 = linear(ks[2], ks[3], hidden, hidden)
    wp, bp = linear(ks[4], ks[5], hidden, action_dim)
    wv, bv = linear(ks[6], ks[7], hidden, 1)
    return {"w1": w1, "b1": b1, "w2": w2, "b2": b2,
            "wp": wp, "bp": bp, "wv": wv, "bv": bv}


def reference_forward(x, p, matmul_dtype=jnp.float32):
    """Pure-JAX reference.  matmul_dtype=bf16 mirrors the kernel's operand cast."""
    cast = lambda a: a.astype(matmul_dtype)
    h1 = jnp.maximum(
        jnp.dot(cast(x), cast(p["w1"]), preferred_element_type=jnp.float32)
        + p["b1"], 0.0)
    h2 = jnp.maximum(
        jnp.dot(cast(h1), cast(p["w2"]), preferred_element_type=jnp.float32)
        + p["b2"], 0.0)
    logits = jnp.dot(cast(h2), cast(p["wp"]),
                     preferred_element_type=jnp.float32) + p["bp"]
    policy = jax.nn.softmax(logits, axis=-1)
    value = jnp.tanh(
        jnp.dot(cast(h2), cast(p["wv"]), preferred_element_type=jnp.float32)
        + p["bv"])
    return policy, value


if __name__ == "__main__":
    # Small shapes consistent with the module: flat observation vector in,
    # discrete action distribution + scalar value out.
    batch = 8
    input_dim = 16     # len(observation)
    action_dim = 8     # env.action_space.n

    key = jax.random.PRNGKey(0)
    kx, kp = jax.random.split(key)
    x = jax.random.normal(kx, (batch, input_dim), jnp.float32)
    params = init_params(kp, input_dim, action_dim)

    policy, value = alphazero_forward(x, params)
    policy, value = jax.block_until_ready((policy, value))

    assert policy.shape == (batch, action_dim) and value.shape == (batch, 1)

    # Tight check against a bf16-matched reference (same operand precision).
    ref_p_bf16, ref_v_bf16 = reference_forward(x, params, jnp.bfloat16)
    assert jnp.allclose(policy, ref_p_bf16, atol=2e-3, rtol=2e-3)
    assert jnp.allclose(value, ref_v_bf16, atol=2e-3, rtol=2e-3)

    # Looser sanity check against the full-f32 reference.
    ref_p_f32, ref_v_f32 = reference_forward(x, params, jnp.float32)
    assert jnp.allclose(policy, ref_p_f32, atol=5e-2, rtol=5e-2)
    assert jnp.allclose(value, ref_v_f32, atol=5e-2, rtol=5e-2)

    # Softmax rows sum to 1.
    assert jnp.allclose(jnp.sum(policy, axis=-1), 1.0, atol=1e-5)

    print("KERNEL_OK")
</pallas_src>

<mosaic_0001>
module attributes {stable_mosaic.version = 11 : i64} {
  func.func @alphazero_kernel(%arg0: i32, %arg1: memref<8x128xbf16, #tpu.memory_space<vmem>>, %arg2: memref<128x128xbf16, #tpu.memory_space<vmem>>, %arg3: memref<1x128xf32, #tpu.memory_space<vmem>>, %arg4: memref<128x128xbf16, #tpu.memory_space<vmem>>, %arg5: memref<1x128xf32, #tpu.memory_space<vmem>>, %arg6: memref<128x128xbf16, #tpu.memory_space<vmem>>, %arg7: memref<1x128xf32, #tpu.memory_space<vmem>>, %arg8: memref<8x128xf32, #tpu.memory_space<vmem>>) attributes {dimension_semantics = [#tpu.dimension_semantics<parallel>], iteration_bounds = array<i64: 1>, scalar_prefetch = 0 : i64, scratch_operands = 0 : i64, tpu.core_type = #tpu.core_type<tc>, window_params = [{transform_indices = @transform_0, window_bounds = array<i64: 8, 128>}, {pipeline_mode = #tpu.pipeline_mode<synchronous>, transform_indices = @transform_1, window_bounds = array<i64: 128, 128>}, {pipeline_mode = #tpu.pipeline_mode<synchronous>, transform_indices = @transform_2, window_bounds = array<i64: 1, 128>}, {pipeline_mode = #tpu.pipeline_mode<synchronous>, transform_indices = @transform_3, window_bounds = array<i64: 128, 128>}, {pipeline_mode = #tpu.pipeline_mode<synchronous>, transform_indices = @transform_4, window_bounds = array<i64: 1, 128>}, {pipeline_mode = #tpu.pipeline_mode<synchronous>, transform_indices = @transform_5, window_bounds = array<i64: 128, 128>}, {pipeline_mode = #tpu.pipeline_mode<synchronous>, transform_indices = @transform_6, window_bounds = array<i64: 1, 128>}, {transform_indices = @transform_7, window_bounds = array<i64: 8, 128>}]} {
    %c0 = arith.constant 0 : index
    %c0_0 = arith.constant 0 : index
    %0 = vector.load %arg1[%c0, %c0_0] : memref<8x128xbf16, #tpu.memory_space<vmem>>, vector<8x128xbf16>
    %c0_1 = arith.constant 0 : index
    %c0_2 = arith.constant 0 : index
    %1 = vector.load %arg2[%c0_1, %c0_2] : memref<128x128xbf16, #tpu.memory_space<vmem>>, vector<128x128xbf16>
    %cst = arith.constant dense<0.000000e+00> : vector<8x128xf32>
    %2 = tpu.matmul %0, %1, %cst {dimension_numbers = #tpu.dot_dimension_numbers<[1], [0], [0], [1], [0, 0, 1, 1], [], []>} : vector<8x128xbf16>, vector<128x128xbf16>, vector<8x128xf32> -> vector<8x128xf32>
    %c0_3 = arith.constant 0 : index
    %c0_4 = arith.constant 0 : index
    %3 = vector.load %arg3[%c0_3, %c0_4] : memref<1x128xf32, #tpu.memory_space<vmem>>, vector<1x128xf32>
    %4 = vector.broadcast %3 : vector<1x128xf32> to vector<8x128xf32>
    %5 = arith.addf %2, %4 : vector<8x128xf32>
    %cst_5 = arith.constant 0.000000e+00 : f32
    %6 = vector.broadcast %cst_5 : f32 to vector<8x128xf32>
    %7 = arith.maximumf %5, %6 : vector<8x128xf32>
    %8 = arith.truncf %7 : vector<8x128xf32> to vector<8x128xbf16>
    %c0_6 = arith.constant 0 : index
    %c0_7 = arith.constant 0 : index
    %9 = vector.load %arg4[%c0_6, %c0_7] : memref<128x128xbf16, #tpu.memory_space<vmem>>, vector<128x128xbf16>
    %cst_8 = arith.constant dense<0.000000e+00> : vector<8x128xf32>
    %10 = tpu.matmul %8, %9, %cst_8 {dimension_numbers = #tpu.dot_dimension_numbers<[1], [0], [0], [1], [0, 0, 1, 1], [], []>} : vector<8x128xbf16>, vector<128x128xbf16>, vector<8x128xf32> -> vector<8x128xf32>
    %c0_9 = arith.constant 0 : index
    %c0_10 = arith.constant 0 : index
    %11 = vector.load %arg5[%c0_9, %c0_10] : memref<1x128xf32, #tpu.memory_space<vmem>>, vector<1x128xf32>
    %12 = vector.broadcast %11 : vector<1x128xf32> to vector<8x128xf32>
    %13 = arith.addf %10, %12 : vector<8x128xf32>
    %cst_11 = arith.constant 0.000000e+00 : f32
    %14 = vector.broadcast %cst_11 : f32 to vector<8x128xf32>
    %15 = arith.maximumf %13, %14 : vector<8x128xf32>
    %16 = arith.truncf %15 : vector<8x128xf32> to vector<8x128xbf16>
    %c0_12 = arith.constant 0 : index
    %c0_13 = arith.constant 0 : index
    %17 = vector.load %arg6[%c0_12, %c0_13] : memref<128x128xbf16, #tpu.memory_space<vmem>>, vector<128x128xbf16>
    %cst_14 = arith.constant dense<0.000000e+00> : vector<8x128xf32>
    %18 = tpu.matmul %16, %17, %cst_14 {dimension_numbers = #tpu.dot_dimension_numbers<[1], [0], [0], [1], [0, 0, 1, 1], [], []>} : vector<8x128xbf16>, vector<128x128xbf16>, vector<8x128xf32> -> vector<8x128xf32>
    %c0_15 = arith.constant 0 : index
    %c0_16 = arith.constant 0 : index
    %19 = vector.load %arg7[%c0_15, %c0_16] : memref<1x128xf32, #tpu.memory_space<vmem>>, vector<1x128xf32>
    %20 = vector.broadcast %19 : vector<1x128xf32> to vector<8x128xf32>
    %21 = arith.addf %18, %20 : vector<8x128xf32>
    %22 = tpu.iota {dimensions = array<i32: 1>} : vector<8x128xi32>
    %c8_i32 = arith.constant 8 : i32
    %23 = vector.broadcast %c8_i32 : i32 to vector<8x128xi32>
    %24 = arith.cmpi slt, %22, %23 : vector<8x128xi32>
    %cst_17 = arith.constant -1.000000e+30 : f32
    %25 = vector.broadcast %cst_17 : f32 to vector<8x128xf32>
    %26 = arith.select %24, %21, %25 : vector<8x128xi1>, vector<8x128xf32>
    %cst_18 = arith.constant dense<0xFF800000> : vector<8xf32>
    %27 = vector.multi_reduction <maximumf>, %26, %cst_18 [1] : vector<8x128xf32> to vector<8xf32>
    %28 = vector.shape_cast %27 : vector<8xf32> to vector<8x1xf32>
    %29 = vector.broadcast %28 : vector<8x1xf32> to vector<8x128xf32>
    %30 = arith.subf %26, %29 : vector<8x128xf32>
    %31 = math.exp %30 : vector<8x128xf32>
    %cst_19 = arith.constant 0.000000e+00 : f32
    %32 = vector.broadcast %cst_19 : f32 to vector<8x128xf32>
    %33 = arith.select %24, %31, %32 : vector<8x128xi1>, vector<8x128xf32>
    %cst_20 = arith.constant dense<0.000000e+00> : vector<8xf32>
    %34 = vector.multi_reduction <add>, %33, %cst_20 [1] : vector<8x128xf32> to vector<8xf32>
    %35 = vector.shape_cast %34 : vector<8xf32> to vector<8x1xf32>
    %cst_21 = arith.constant 1.000000e+00 : f32
    %36 = vector.broadcast %cst_21 : f32 to vector<8x1xf32>
    %37 = arith.divf %36, %35 : vector<8x1xf32>
    %38 = vector.broadcast %37 : vector<8x1xf32> to vector<8x128xf32>
    %39 = arith.mulf %33, %38 : vector<8x128xf32>
    %40 = math.tanh %21 : vector<8x128xf32>
    %c8_i32_22 = arith.constant 8 : i32
    %41 = vector.broadcast %c8_i32_22 : i32 to vector<8x128xi32>
    %42 = arith.cmpi eq, %22, %41 : vector<8x128xi32>
    %cst_23 = arith.constant 0.000000e+00 : f32
    %43 = vector.broadcast %cst_23 : f32 to vector<8x128xf32>
    %44 = arith.select %42, %40, %43 : vector<8x128xi1>, vector<8x128xf32>
    %45 = arith.select %24, %39, %44 : vector<8x128xi1>, vector<8x128xf32>
    %c0_24 = arith.constant 0 : index
    %c0_25 = arith.constant 0 : index
    %46 = vector.load %arg8[%c0_24, %c0_25] : memref<8x128xf32, #tpu.memory_space<vmem>>, vector<8x128xf32>
    tpu.vector_store %arg8[%c0_24, %c0_25], %45 {strides = array<i32>} : memref<8x128xf32, #tpu.memory_space<vmem>>, vector<8x128xf32>,
    return
  }
  func.func @transform_0(%arg0: i32) -> (i32, i32) {
    %c0_i32 = arith.constant 0 : i32
    %c0_i32_0 = arith.constant 0 : i32
    return %arg0, %c0_i32 : i32, i32
  }
  func.func @transform_1(%arg0: i32) -> (i32, i32) {
    %c0_i32 = arith.constant 0 : i32
    %c0_i32_0 = arith.constant 0 : i32
    %c0_i32_1 = arith.constant 0 : i32
    return %c0_i32, %c0_i32_0 : i32, i32
  }
  func.func @transform_2(%arg0: i32) -> (i32, i32) {
    %c0_i32 = arith.constant 0 : i32
    %c0_i32_0 = arith.constant 0 : i32
    %c0_i32_1 = arith.constant 0 : i32
    return %c0_i32, %c0_i32_0 : i32, i32
  }
  func.func @transform_3(%arg0: i32) -> (i32, i32) {
    %c0_i32 = arith.constant 0 : i32
    %c0_i32_0 = arith.constant 0 : i32
    %c0_i32_1 = arith.constant 0 : i32
    return %c0_i32, %c0_i32_0 : i32, i32
  }
  func.func @transform_4(%arg0: i32) -> (i32, i32) {
    %c0_i32 = arith.constant 0 : i32
    %c0_i32_0 = arith.constant 0 : i32
    %c0_i32_1 = arith.constant 0 : i32
    return %c0_i32, %c0_i32_0 : i32, i32
  }
  func.func @transform_5(%arg0: i32) -> (i32, i32) {
    %c0_i32 = arith.constant 0 : i32
    %c0_i32_0 = arith.constant 0 : i32
    %c0_i32_1 = arith.constant 0 : i32
    return %c0_i32, %c0_i32_0 : i32, i32
  }
  func.func @transform_6(%arg0: i32) -> (i32, i32) {
    %c0_i32 = arith.constant 0 : i32
    %c0_i32_0 = arith.constant 0 : i32
    %c0_i32_1 = arith.constant 0 : i32
    return %c0_i32, %c0_i32_0 : i32, i32
  }
  func.func @transform_7(%arg0: i32) -> (i32, i32) {
    %c0_i32 = arith.constant 0 : i32
    %c0_i32_0 = arith.constant 0 : i32
    return %arg0, %c0_i32 : i32, i32
  }
}

</mosaic_0001>

<bundles_post_ra>
// kernel: tpu_custom_call.1
= control target key start
LH: loop header
LB: loop body
LE: loop exit
PB: predicated region body
PF: predicated region fallthrough
CT: control target
= control target key end

     0   :  { %12 = vsyncpa [#allocation3], 0  ;;  %s887_s0 = inlined_call_operand.hbm [shape: bf16[8,128], index: 0, kind: input, shape index: {}]   ;;  %s888_s1 = inlined_call_operand.hbm [shape: bf16[128,128], index: 1, kind: input, shape index: {}]   ;;  %s889_s2 = inlined_call_operand.vmem [shape: f32[1,128], index: 2, kind: input, shape index: {}]   ;;  %s890_s3 = inlined_call_operand.hbm [shape: bf16[128,128], index: 3, kind: input, shape index: {}]   ;;  %s891_s4 = inlined_call_operand.vmem [shape: f32[1,128], index: 4, kind: input, shape index: {}]   ;;  %s892_s5 = inlined_call_operand.hbm [shape: bf16[128,128], index: 5, kind: input, shape index: {}]   ;;  %s893_s6 = inlined_call_operand.vmem [shape: f32[1,128], index: 6, kind: input, shape index: {}]   ;;  %s894_s7 = inlined_call_operand.hbm [shape: f32[8,128], index: 7, kind: output, shape index: {}]  }
   0x1   :  { %13 = vsyncpa [#allocation6], 0 }
   0x2   :  { %14 = vsyncpa [#allocation9], 0 }
   0x3   :  { %15 = vsyncpa [#allocation4], 0  ;;  %s727_s24 = smov [#allocation5]   ;;  %s609_s28 = scalar_lea.hbm %s888_s1, 1024 }
   0x4   :  { %s31_s25 = sshll.u32 %s727_s24, 4  ;;  %p610_p0 = scmp.ne.s32.totalorder %s888_s1, %s609_s28  ;;  %s32_s25 = int_to_ptr.vmem [resolvable:$true] %s31_s25 }
   0x5   :  { %p613_p1 = scmp.lt.u32.totalorder %s609_s28, %s888_s1 }
   0x7   :  { %p615_p2 = pnand %p613_p1, %p610_p0 }
   0x9   :  { %618 = shalt.err (!%p615_p2)
}
   0xa   :  { %s619_s10 = scalar_lea.vmem %s32_s25, 1024  ;;  %p624_p4 = scmp.lt.s32.totalorder %s32_s25, %s32_s25 }
   0xb   :  { %p620_p3 = scmp.ne.s32.totalorder %s32_s25, %s619_s10  ;;  %p625_p5 = scmp.lt.s32.totalorder %s619_s10, %s619_s10 }
   0xd   :  { %p626_p6 = por %p625_p5, %p624_p4 }
   0xf   :  { %p627_p7 = pnand %p626_p6, %p620_p3 }
  0x11   :  { %630 = shalt.err (!%p627_p7)
}
  0x12   :  { %s728_s11 = smov 64   ;;  %s729_s12 = smov 4  }
  0x13   :  { %37 = dma.hbm_to_vmem [thread:$0]  %s888_s1, 1024, %s32_s25, [#allocation6], %s728_s11, %s728_s11, %s729_s12  }
  0x14   :  { %s730_s15 = smov [#allocation2]   ;;  %s731_s17 = smov [#allocation7]  }
  0x15   :  { %s22_s16 = sshll.u32 %s730_s15, 4  ;;  %s45_s18 = sshll.u32 %s731_s17, 4  ;;  %s23_s16 = int_to_ptr.vmem [resolvable:$true] %s22_s16  ;;  %s46_s18 = int_to_ptr.vmem [resolvable:$true] %s45_s18 }
  0x16   :  { %s631_s21 = scalar_lea.hbm %s887_s0, 64 }
  0x17   :  { %p632_p8 = scmp.ne.s32.totalorder %s887_s0, %s631_s21  ;;  %p635_p9 = scmp.lt.u32.totalorder %s631_s21, %s887_s0 }
  0x19   :  { %p637_p10 = pnand %p635_p9, %p632_p8 }
  0x1b   :  { %640 = shalt.err (!%p637_p10)
}
  0x1c   :  { %s641_s1 = scalar_lea.vmem %s23_s16, 64  ;;  %p646_p12 = scmp.lt.s32.totalorder %s23_s16, %s23_s16 }
  0x1d   :  { %p642_p11 = scmp.ne.s32.totalorder %s23_s16, %s641_s1  ;;  %p647_p13 = scmp.lt.s32.totalorder %s641_s1, %s641_s1 }
  0x1f   :  { %p648_p0 = por %p647_p13, %p646_p12 }
  0x21   :  { %p649_p1 = pnand %p648_p0, %p642_p11 }
  0x23   :  { %652 = shalt.err (!%p649_p1)
}
  0x24   :  { %25 = dma.hbm_to_vmem [thread:$0]  %s887_s0, 64, %s23_s16, [#allocation3]  }
  0x25   :  { %s653_s30 = scalar_lea.hbm %s890_s3, 1024 }
  0x26   :  { %p654_p2 = scmp.ne.s32.totalorder %s890_s3, %s653_s30  ;;  %p657_p3 = scmp.lt.u32.totalorder %s653_s30, %s890_s3 }
  0x28   :  { %p659_p4 = pnand %p657_p3, %p654_p2 }
  0x2a   :  { %662 = shalt.err (!%p659_p4)
}
  0x2b   :  { %s663_s14 = scalar_lea.vmem %s46_s18, 1024  ;;  %p668_p6 = scmp.lt.s32.totalorder %s46_s18, %s46_s18 }
  0x2c   :  { %p664_p5 = scmp.ne.s32.totalorder %s46_s18, %s663_s14  ;;  %p669_p7 = scmp.lt.s32.totalorder %s663_s14, %s663_s14 }
  0x2e   :  { %p670_p8 = por %p669_p7, %p668_p6 }
  0x30   :  { %p671_p9 = pnand %p670_p8, %p664_p5 }
  0x32   :  { %674 = shalt.err (!%p671_p9)
}
  0x33   :  { %51 = dma.hbm_to_vmem [thread:$0]  %s890_s3, 1024, %s46_s18, [#allocation6], %s728_s11, %s728_s11, %s729_s12  }
  0x34   :  { %s732_s16 = smov [#allocation8]   ;;  %s675_s21 = scalar_lea.hbm %s892_s5, 1024 }
  0x35   :  { %s59_s17 = sshll.u32 %s732_s16, 4  ;;  %p676_p10 = scmp.ne.s32.totalorder %s892_s5, %s675_s21  ;;  %s60_s17 = int_to_ptr.vmem [resolvable:$true] %s59_s17 }
  0x36   :  { %p679_p11 = scmp.lt.u32.totalorder %s675_s21, %s892_s5 }
  0x38   :  { %p681_p12 = pnand %p679_p11, %p676_p10 }
  0x3a   :  { %684 = shalt.err (!%p681_p12)
}
  0x3b   :  { %s685_s1 = scalar_lea.vmem %s60_s17, 1024  ;;  %p690_p0 = scmp.lt.s32.totalorder %s60_s17, %s60_s17 }
  0x3c   :  { %p686_p13 = scmp.ne.s32.totalorder %s60_s17, %s685_s1  ;;  %p691_p1 = scmp.lt.s32.totalorder %s685_s1, %s685_s1 }
  0x3e   :  { %p692_p2 = por %p691_p1, %p690_p0 }
  0x40   :  { %p693_p3 = pnand %p692_p2, %p686_p13 }
  0x42   :  { %696 = shalt.err (!%p693_p3)
}
  0x43   :  { %65 = dma.hbm_to_vmem [thread:$0]  %s892_s5, 1024, %s60_s17, [#allocation9], %s728_s11, %s728_s11, %s729_s12  }
  0x44   :  { %719 = dma.done.wait [#allocation3], 64  }
  0x45   :  { %720 = vsyncadd [#allocation3], 4294967232 }
  0x46   :  { %721 = dma.done.wait [#allocation6], 2048  }
  0x47   :  { %722 = vsyncadd [#allocation6], 4294965248 }
  0x48   :  { %723 = dma.done.wait [#allocation9], 1024  }
  0x49   :  { %724 = vsyncadd [#allocation9], 4294966272  ;;  %v733_v0 = vmov 0.0   ;;  %vm734_vm0 = vmmov 0   ;;  %v579_v1 = vld [vmem:[#allocation5] sm:$0xff]   ;;  %v580_v2 = vld [vmem:[#allocation5 + $0x8] sm:$0xff]   ;;  %v419_v42 = vlaneseq }
  0x4a   :  { %510 = vmatprep.subr.bf16.mxu0 %v733_v0  ;;  %526 = vmatprep.mubr.msk.bf16.mxu0 %vm734_vm0, %v733_v0  ;;  %v581_v3 = vld [vmem:[#allocation5 + $0x10] sm:$0xff]   ;;  %v587_v4 = vld [vmem:[#allocation7] sm:$0xff]   ;;  %v582_v5 = vld [vmem:[#allocation5 + $0x18] sm:$0xff]  }
  0x4b   :  { %530 = vmatprep.subr.bf16.mxu1 %v733_v0  ;;  %546 = vmatprep.mubr.msk.bf16.mxu1 %vm734_vm0, %v733_v0  ;;  %v588_v6 = vld [vmem:[#allocation7 + $0x8] sm:$0xff]   ;;  %v583_v7 = vld [vmem:[#allocation5 + $0x20] sm:$0xff]   ;;  %v589_v8 = vld [vmem:[#allocation7 + $0x10] sm:$0xff]   ;;  %v420_v43 = vand.u32 127, %v419_v42 }
  0x4c   :  { %511 = vmatpush3.bf16.msra.mxu0 %v579_v1  ;;  %531 = vmatpush3.bf16.msra.mxu1 %v587_v4  ;;  %v584_v9 = vld [vmem:[#allocation5 + $0x28] sm:$0xff]   ;;  %v590_v10 = vld [vmem:[#allocation7 + $0x18] sm:$0xff]   ;;  %v585_v11 = vld [vmem:[#allocation5 + $0x30] sm:$0xff]  }
  0x4d   :  { %512 = vmatprep.subr.bf16.mxu0 %v733_v0  ;;  %532 = vmatprep.subr.bf16.mxu1 %v733_v0  ;;  %v591_v12 = vld [vmem:[#allocation7 + $0x20] sm:$0xff]   ;;  %v586_v13 = vld [vmem:[#allocation5 + $0x38] sm:$0xff]   ;;  %v592_v14 = vld [vmem:[#allocation7 + $0x28] sm:$0xff]   ;;  %vm421_vm1 = vcmp.lt.s32.totalorder %v420_v43, 8  ;;  %vm435_vm2 = vcmp.eq.s32.totalorder %v420_v43, 8 }
  0x4e   :  { %v81_v15 = vld [vmem:[#allocation2] sm:$0xf]  ;;  %v593_v16 = vld [vmem:[#allocation7 + $0x30] sm:$0xff]   ;;  %v595_v18 = vld [vmem:[#allocation8] sm:$0xff]  }
  0x4f   :  { %v594_v17 = vld [vmem:[#allocation7 + $0x38] sm:$0xff]   ;;  %v596_v19 = vld [vmem:[#allocation8 + $0x8] sm:$0xff]   ;;  %v597_v20 = vld [vmem:[#allocation8 + $0x10] sm:$0xff]  }
  0x50   :  { %513 = vmatpush3.bf16.msra.mxu0 %v580_v2  ;;  %533 = vmatpush3.bf16.msra.mxu1 %v588_v6  ;;  %v598_v21 = vld [vmem:[#allocation8 + $0x18] sm:$0xff]   ;;  %v599_v22 = vld [vmem:[#allocation8 + $0x20] sm:$0xff]   ;;  %v600_v23 = vld [vmem:[#allocation8 + $0x28] sm:$0xff]  }
  0x51   :  { %514 = vmatprep.subr.bf16.mxu0 %v733_v0  ;;  %534 = vmatprep.subr.bf16.mxu1 %v733_v0  ;;  %v456_v24 = vld [vmem:[%s889_s2] ss:$0 sm:$0xff]  ;;  %v601_v32 = vld [vmem:[#allocation8 + $0x30] sm:$0xff]  }
  0x52   :  { %v602_v33 = vld [vmem:[#allocation8 + $0x38] sm:$0xff]  }
  0x53   :  { %v465_v34 = vld [vmem:[%s891_s4] ss:$0 sm:$0xff]  ;;  %s735_s4 = smov [#allocation10]  }
  0x54   :  { %515 = vmatpush3.bf16.msra.mxu0 %v581_v3  ;;  %535 = vmatpush3.bf16.msra.mxu1 %v589_v8  ;;  %v474_v44 = vld [vmem:[%s893_s6] ss:$0 sm:$0xff]  ;;  %s445_s6 = sshll.u32 %s735_s4, 4  ;;  %s446_s6 = int_to_ptr.vmem [resolvable:$true] %s445_s6 }
  0x55   :  { %516 = vmatprep.subr.bf16.mxu0 %v733_v0  ;;  %536 = vmatprep.subr.bf16.mxu1 %v733_v0  ;;  %s697_s28 = scalar_lea.vmem %s446_s6, 128  ;;  %p702_p5 = scmp.lt.s32.totalorder %s446_s6, %s446_s6 }
  0x56   :  { %p698_p4 = scmp.ne.s32.totalorder %s446_s6, %s697_s28  ;;  %p703_p6 = scmp.lt.s32.totalorder %s697_s28, %s697_s28 }
  0x58   :  { %517 = vmatpush3.bf16.msra.mxu0 %v582_v5  ;;  %537 = vmatpush3.bf16.msra.mxu1 %v590_v10  ;;  %p704_p7 = por %p703_p6, %p702_p5 }
  0x59   :  { %518 = vmatprep.subr.bf16.mxu0 %v733_v0  ;;  %538 = vmatprep.subr.bf16.mxu1 %v733_v0 }
  0x5a   :  { %p705_p8 = pnand %p704_p7, %p698_p4 }
  0x5c   :  { %519 = vmatpush3.bf16.msra.mxu0 %v583_v7  ;;  %539 = vmatpush3.bf16.msra.mxu1 %v591_v12 }
  0x5d   :  { %520 = vmatprep.subr.bf16.mxu0 %v733_v0  ;;  %540 = vmatprep.subr.bf16.mxu1 %v733_v0 }
  0x60   :  { %521 = vmatpush3.bf16.msra.mxu0 %v584_v9  ;;  %541 = vmatpush3.bf16.msra.mxu1 %v592_v14 }
  0x61   :  { %522 = vmatprep.subr.bf16.mxu0 %v733_v0  ;;  %542 = vmatprep.subr.bf16.mxu1 %v733_v0 }
  0x64   :  { %523 = vmatpush3.bf16.msra.mxu0 %v585_v11  ;;  %543 = vmatpush3.bf16.msra.mxu1 %v593_v16 }
  0x65   :  { %524 = vmatprep.subr.bf16.mxu0 %v733_v0  ;;  %544 = vmatprep.subr.bf16.mxu1 %v733_v0 }
  0x68   :  { %525 = vmatpush3.bf16.msra.mxu0 %v586_v13  ;;  %545 = vmatpush3.bf16.msra.mxu1 %v594_v17 }
  0x69   :  { %550 = vmatprep.subr.bf16.mxu0 %v733_v0 }
  0x6b   :  { %527 = vmatmul.mubr.bf16.vlgmr.msra.gmra.mrb[0].mxu0 %v81_v15 }
  0x6c   :  { %566 = vmatprep.mubr.msk.bf16.mxu0 %vm734_vm0, %v733_v0  ;;  %551 = vmatpush3.bf16.msra.mxu0 %v595_v18 }
  0x6d   :  { %552 = vmatprep.subr.bf16.mxu0 %v733_v0 }
  0x70   :  { %553 = vmatpush3.bf16.msra.mxu0 %v596_v19 }
  0x71   :  { %554 = vmatprep.subr.bf16.mxu0 %v733_v0 }
  0x74   :  { %555 = vmatpush3.bf16.msra.mxu0 %v597_v20 }
  0x75   :  { %556 = vmatprep.subr.bf16.mxu0 %v733_v0 }
  0x78   :  { %557 = vmatpush3.bf16.msra.mxu0 %v598_v21 }
  0x79   :  { %558 = vmatprep.subr.bf16.mxu0 %v733_v0 }
  0x7c   :  { %559 = vmatpush3.bf16.msra.mxu0 %v599_v22 }
  0x7d   :  { %560 = vmatprep.subr.bf16.mxu0 %v733_v0 }
  0x80   :  { %561 = vmatpush3.bf16.msra.mxu0 %v600_v23 }
  0x81   :  { %562 = vmatprep.subr.bf16.mxu0 %v733_v0 }
  0x84   :  { %563 = vmatpush3.bf16.msra.mxu0 %v601_v32 }
  0x85   :  { %564 = vmatprep.subr.bf16.mxu0 %v733_v0 }
  0x88   :  { %565 = vmatpush3.bf16.msra.mxu0 %v602_v33 }
 0x13e   :  { %v187_v25 = vpop.f32.mrb[0].mxu0 }
 0x13f   :  { %v188_v26 = vadd.f32 %v456_v24, %v187_v25  ;;  %v528_v27 = vpop.f32.mrb[1].mxu0 }
 0x140   :  { %v190_v28 = vpop.f32.mrb[2].mxu0 }
 0x141   :  { %v193_v29 = vmax.f32 %v188_v26, 0.0  ;;  %v529_v30 = vpop.f32.mrb[3].mxu0 }
 0x143   :  { %v194_v31 = vpack.c.bf16 %v193_v29, %v193_v29 }
 0x145   :  { %547 = vmatmul.mubr.bf16.vlgmr.msra.gmra.mrb[0].mxu1 %v194_v31 }
 0x218   :  { %v300_v35 = vpop.f32.mrb[0].mxu1 }
 0x219   :  { %v301_v36 = vadd.f32 %v465_v34, %v300_v35  ;;  %v548_v37 = vpop.f32.mrb[1].mxu1 }
 0x21a   :  { %v303_v38 = vpop.f32.mrb[2].mxu1 }
 0x21b   :  { %v306_v39 = vmax.f32 %v301_v36, 0.0  ;;  %v549_v40 = vpop.f32.mrb[3].mxu1 }
 0x21d   :  { %v307_v41 = vpack.c.bf16 %v306_v39, %v306_v39 }
 0x21f   :  { %567 = vmatmul.mubr.bf16.vlgmr.msra.gmra.mrb[4].mxu0 %v307_v41 }
 0x2f2   :  { %v413_v45 = vpop.f32.mrb[4].mxu0 }
 0x2f3   :  { %v414_v46 = vadd.f32 %v474_v44, %v413_v45  ;;  %v568_v47 = vpop.f32.mrb[5].mxu0 }
 0x2f4   :  { %v416_v48 = vpop.f32.mrb[6].mxu0 }
 0x2f5   :  { %603 = vtanh.f32 %v414_v46  ;;  %v569_v49 = vpop.f32.mrb[7].mxu0  ;;  %v422_v50 = vsel %vm421_vm1, %v414_v46, -1e+30 }
 0x2f6   :  { %423 = vmax.xlane.f32.xlu0 %v422_v50 }
 0x2ff   :  { %v604_v51 = vpop.eup %603 }
 0x300   :  { %v436_v52 = vsel %vm435_vm2, %v604_v51, 0.0 }
 0x383   :  { %v424_v53 = vpop.xlane.xlu0 %423 }
 0x384   :  { %v425_v54 = vsub.f32 %v422_v50, %v424_v53 }
 0x386   :  { %v426_v55 = vmul.f32 1.442695, %v425_v54 }
 0x388   :  { %605 = vpow2.f32 %v426_v55 }
 0x392   :  { %v606_v56 = vpop.eup %605 }
 0x393   :  { %v428_v57 = vsel %vm421_vm1, %v606_v56, 0.0 }
 0x394   :  { %429 = vadd.xlane.f32.xlu0 %v428_v57 }
 0x421   :  { %v430_v58 = vpop.xlane.xlu0 %429 }
 0x422   :  { %607 = vrcp.f32 %v430_v58 }
 0x42c   :  { %v608_v59 = vpop.eup %607 }
 0x42d   :  { %v433_v60 = vmul.f32 %v608_v59, %v428_v57 }
 0x42f   :  { %v437_v61 = vsel %vm421_vm1, %v433_v60, %v436_v52 }
 0x430   :  { %438 = vst [vmem:[#allocation10] sm:$0xff] %v437_v61 }
 0x431   :  { %708 = shalt.err (!%p705_p8)
}
 0x432   :  { %s709_s8 = scalar_lea.hbm %s894_s7, 128 }
 0x433   :  { %p710_p9 = scmp.ne.s32.totalorder %s894_s7, %s709_s8  ;;  %p713_p10 = scmp.lt.u32.totalorder %s709_s8, %s894_s7 }
 0x435   :  { %p715_p11 = pnand %p713_p10, %p710_p9 }
 0x437   :  { %718 = shalt.err (!%p715_p11)
}
 0x438   :  { %448 = dma.vmem_to_hbm [thread:$0]  %s446_s6, 128, %s894_s7, [#allocation4]  }
 0x439   :  { %725 = dma.done.wait [#allocation4], 128  }
 0x43a   :  { %726 = vsyncadd [#allocation4], 4294967168 }
 0x43b   :  { %452 = vsyncpa [#allocation3], 1 }
 0x43c   :  { %453 = vsyncpa [#allocation6], 1 }
 0x43d   :  { %454 = vsyncpa [#allocation9], 1 }
 0x43e   :  { %455 = vsyncpa [#allocation4], 1 }

</bundles_post_ra>
